<compile_context>
chip_gen: v7x
topology: tpu7x:2x2x1
jax: 0.10.0
libtpu: 0.0.40
codegen_flags: <defaults>
</compile_context>

<pallas_src>
import jax
import jax.numpy as jnp
from jax.experimental import pallas as pl
from jax.experimental.pallas import tpu as pltpu


def sequential_kernel(x_ref, w1_ref, b1_ref, w2_ref, b2_ref, o_ref):
    # item 0: Linear(D_in -> H)   -- MXU, f32 accumulation.
    h = jnp.dot(x_ref[...].astype(w1_ref.dtype), w1_ref[...],
                preferred_element_type=jnp.float32)
    # bias add + item 1: ReLU     -- VPU, kept in f32 (v5e has no bf16 VPU).
    h = jnp.maximum(h + b1_ref[...], 0.0)
    # item 2: Linear(H -> D_out)  -- MXU, f32 accumulation.
    y = jnp.dot(h.astype(w2_ref.dtype), w2_ref[...],
                preferred_element_type=jnp.float32)
    # bias add + item 3: Tanh     -- VPU + EUP, f32.
    o_ref[...] = jnp.tanh(y + b2_ref[...]).astype(o_ref.dtype)


def _round_up(x, m):
    return ((x + m - 1) // m) * m


def _sublane_granularity(dtype):
    # Native sublane tiling: f32 -> 8, bf16/f16 -> 16, int8/fp8 -> 32.
    return 32 // jnp.dtype(dtype).itemsize


def _choose_tile_b(batch, tile_b_max, gran):
    if batch <= gran:
        # One block whose sublane dim equals the array dim (always legal).
        return batch
    # At least 2 grid steps so v7x's two TensorCores both get sharded work,
    # tiles balanced so the (masked) last block isn't mostly padding.
    n_tiles = max(2, pl.cdiv(batch, tile_b_max))
    return min(tile_b_max, _round_up(pl.cdiv(batch, n_tiles), gran))


def prepare_params(w1, b1, w2, b2, *, param_dtype=jnp.bfloat16):
    """One-time layout / cast of the Sequential parameters (constants).

    Weights are stored pre-transposed ([in, out]) in the stream dtype
    (bf16 by default on all TPU generations); biases stay f32 [1, out] so the
    bias add / activations run in f32 everywhere (incl. v5e).
    """
    return (jnp.asarray(w1, param_dtype),
            jnp.asarray(b1, jnp.float32).reshape(1, -1),
            jnp.asarray(w2, param_dtype),
            jnp.asarray(b2, jnp.float32).reshape(1, -1))


def sequential_forward(x, params, *, tile_b_max=2048, out_dtype=None):
    """Fused forward of Linear -> ReLU -> Linear -> Tanh.

    x: [B, D_in]; params from prepare_params().  out_dtype defaults to
    x.dtype (pass jnp.bfloat16 to halve output HBM writeback if downstream
    allows the precision loss).
    """
    w1, b1, w2, b2 = params
    B, D_in = x.shape
    H = w1.shape[1]
    D_out = w2.shape[1]
    out_dtype = x.dtype if out_dtype is None else jnp.dtype(out_dtype)

    gran = max(_sublane_granularity(x.dtype), _sublane_granularity(out_dtype))
    tile_b = _choose_tile_b(B, tile_b_max, gran)
    grid = (pl.cdiv(B, tile_b),)

    nbytes = lambda a: a.size * a.dtype.itemsize
    cost = pl.CostEstimate(
        flops=2 * B * (D_in * H + H * D_out),
        transcendentals=B * D_out,
        bytes_accessed=(nbytes(x) + nbytes(w1) + nbytes(b1) + nbytes(w2)
                        + nbytes(b2) + B * D_out * out_dtype.itemsize),
    )

    return pl.pallas_call(
        sequential_kernel,
        out_shape=jax.ShapeDtypeStruct((B, D_out), out_dtype),
        grid_spec=pltpu.PrefetchScalarGridSpec(
            num_scalar_prefetch=0,
            grid=grid,
            in_specs=[
                # x tile streamed at its true feature width (no K padding, no
                # wrapper pad/copy pass; last block is masked if partial).
                pl.BlockSpec((tile_b, D_in), lambda i: (i, 0)),
                # Constant index_map => params stay VMEM-resident across the
                # grid (no per-step re-DMA).
                pl.BlockSpec((D_in, H), lambda i: (0, 0)),      # W1
                pl.BlockSpec((1, H), lambda i: (0, 0)),         # b1 (f32)
                pl.BlockSpec((H, D_out), lambda i: (0, 0)),     # W2
                pl.BlockSpec((1, D_out), lambda i: (0, 0)),     # b2 (f32)
            ],
            # True-width output (D_out=16): masked stores, but 8x fewer HBM
            # writeback bytes than lane-padding to 128 and no slice pass.
            out_specs=pl.BlockSpec((tile_b, D_out), lambda i: (i, 0)),
        ),
        compiler_params=pltpu.CompilerParams(
            dimension_semantics=("parallel",)),
        cost_estimate=cost,
    )(x, w1, b1, w2, b2)


def sequential_reference(x, w1, b1, w2, b2):
    # Plain-JAX reference of the same chained forward (f32 end to end).
    h = jnp.maximum(x @ w1 + b1.reshape(1, -1), 0.0)
    return jnp.tanh(h @ w2 + b2.reshape(1, -1))


if __name__ == "__main__":
    key = jax.random.PRNGKey(0)
    kx, kw1, kb1, kw2, kb2, kx2 = jax.random.split(key, 6)

    B, D_in, H, D_out = 16, 32, 64, 16
    x = jax.random.normal(kx, (B, D_in), dtype=jnp.float32)
    # Deterministic parameter init (uniform, Kaiming-style scale), in-script.
    w1 = jax.random.uniform(kw1, (D_in, H), dtype=jnp.float32,
                            minval=-1.0, maxval=1.0) / jnp.sqrt(D_in)
    b1 = jax.random.uniform(kb1, (H,), dtype=jnp.float32,
                            minval=-0.1, maxval=0.1)
    w2 = jax.random.uniform(kw2, (H, D_out), dtype=jnp.float32,
                            minval=-1.0, maxval=1.0) / jnp.sqrt(H)
    b2 = jax.random.uniform(kb2, (D_out,), dtype=jnp.float32,
                            minval=-0.1, maxval=0.1)

    ref = sequential_reference(x, w1, b1, w2, b2)

    # 1) f32 parameter stream (strict numerics; grid of 2 balanced tiles).
    params_f32 = prepare_params(w1, b1, w2, b2, param_dtype=jnp.float32)
    out = jax.block_until_ready(sequential_forward(x, params_f32))
    assert out.shape == (B, D_out)
    assert jnp.allclose(out, ref, atol=1e-5, rtol=1e-5)

    # 2) Default bf16 parameter stream + bf16 activations + bf16 output
    #    (halved HBM read/write bytes; f32 accumulation and elementwise).
    params_bf16 = prepare_params(w1, b1, w2, b2)
    out_bf16 = jax.block_until_ready(
        sequential_forward(x.astype(jnp.bfloat16), params_bf16,
                           out_dtype=jnp.bfloat16))
    assert out_bf16.dtype == jnp.bfloat16
    assert jnp.allclose(out_bf16.astype(jnp.float32), ref,
                        atol=5e-2, rtol=5e-2)

    # 3) Batch not divisible by the tile / not a multiple of 8 (exercises the
    #    balanced-tile + masked partial-last-block path, no wrapper padding).
    B2 = 50
    x2 = jax.random.normal(kx2, (B2, D_in), dtype=jnp.float32)
    out2 = jax.block_until_ready(sequential_forward(x2, params_f32))
    ref2 = sequential_reference(x2, w1, b1, w2, b2)
    assert out2.shape == (B2, D_out)
    assert jnp.allclose(out2, ref2, atol=1e-5, rtol=1e-5)

    # TODO(synk): Sequential.backward / set_zero_grad / optimisation_step are
    # training-time plumbing, not part of the forward pass; not implemented.
    print("KERNEL_OK")
</pallas_src>

<mosaic_0001>
module attributes {stable_mosaic.version = 11 : i64} {
  func.func @sequential_kernel(%arg0: i32, %arg1: memref<8x32xf32, #tpu.memory_space<vmem>>, %arg2: memref<32x64xf32, #tpu.memory_space<vmem>>, %arg3: memref<1x64xf32, #tpu.memory_space<vmem>>, %arg4: memref<64x16xf32, #tpu.memory_space<vmem>>, %arg5: memref<1x16xf32, #tpu.memory_space<vmem>>, %arg6: memref<8x16xf32, #tpu.memory_space<vmem>>) attributes {dimension_semantics = [#tpu.dimension_semantics<parallel>], iteration_bounds = array<i64: 2>, scalar_prefetch = 0 : i64, scratch_operands = 0 : i64, tpu.core_type = #tpu.core_type<tc>, window_params = [{transform_indices = @transform_0, window_bounds = array<i64: 8, 32>}, {pipeline_mode = #tpu.pipeline_mode<synchronous>, transform_indices = @transform_1, window_bounds = array<i64: 32, 64>}, {pipeline_mode = #tpu.pipeline_mode<synchronous>, transform_indices = @transform_2, window_bounds = array<i64: 1, 64>}, {pipeline_mode = #tpu.pipeline_mode<synchronous>, transform_indices = @transform_3, window_bounds = array<i64: 64, 16>}, {pipeline_mode = #tpu.pipeline_mode<synchronous>, transform_indices = @transform_4, window_bounds = array<i64: 1, 16>}, {transform_indices = @transform_5, window_bounds = array<i64: 8, 16>}]} {
    %c0 = arith.constant 0 : index
    %c0_0 = arith.constant 0 : index
    %0 = vector.load %arg1[%c0, %c0_0] : memref<8x32xf32, #tpu.memory_space<vmem>>, vector<8x32xf32>
    %c0_1 = arith.constant 0 : index
    %c0_2 = arith.constant 0 : index
    %1 = vector.load %arg2[%c0_1, %c0_2] : memref<32x64xf32, #tpu.memory_space<vmem>>, vector<32x64xf32>
    %cst = arith.constant dense<0.000000e+00> : vector<8x64xf32>
    %2 = tpu.matmul %0, %1, %cst {dimension_numbers = #tpu.dot_dimension_numbers<[1], [0], [0], [1], [0, 0, 1, 1], [], []>} : vector<8x32xf32>, vector<32x64xf32>, vector<8x64xf32> -> vector<8x64xf32>
    %c0_3 = arith.constant 0 : index
    %c0_4 = arith.constant 0 : index
    %3 = vector.load %arg3[%c0_3, %c0_4] : memref<1x64xf32, #tpu.memory_space<vmem>>, vector<1x64xf32>
    %4 = vector.broadcast %3 : vector<1x64xf32> to vector<8x64xf32>
    %5 = arith.addf %2, %4 : vector<8x64xf32>
    %cst_5 = arith.constant 0.000000e+00 : f32
    %6 = vector.broadcast %cst_5 : f32 to vector<8x64xf32>
    %7 = arith.maximumf %5, %6 : vector<8x64xf32>
    %c0_6 = arith.constant 0 : index
    %c0_7 = arith.constant 0 : index
    %8 = vector.load %arg4[%c0_6, %c0_7] : memref<64x16xf32, #tpu.memory_space<vmem>>, vector<64x16xf32>
    %cst_8 = arith.constant dense<0.000000e+00> : vector<8x16xf32>
    %9 = tpu.matmul %7, %8, %cst_8 {dimension_numbers = #tpu.dot_dimension_numbers<[1], [0], [0], [1], [0, 0, 1, 1], [], []>} : vector<8x64xf32>, vector<64x16xf32>, vector<8x16xf32> -> vector<8x16xf32>
    %c0_9 = arith.constant 0 : index
    %c0_10 = arith.constant 0 : index
    %10 = vector.load %arg5[%c0_9, %c0_10] : memref<1x16xf32, #tpu.memory_space<vmem>>, vector<1x16xf32>
    %11 = vector.broadcast %10 : vector<1x16xf32> to vector<8x16xf32>
    %12 = arith.addf %9, %11 : vector<8x16xf32>
    %13 = math.tanh %12 : vector<8x16xf32>
    %c0_11 = arith.constant 0 : index
    %c0_12 = arith.constant 0 : index
    %14 = vector.load %arg6[%c0_11, %c0_12] : memref<8x16xf32, #tpu.memory_space<vmem>>, vector<8x16xf32>
    tpu.vector_store %arg6[%c0_11, %c0_12], %13 {strides = array<i32>} : memref<8x16xf32, #tpu.memory_space<vmem>>, vector<8x16xf32>,
    return
  }
  func.func @transform_0(%arg0: i32) -> (i32, i32) {
    %c0_i32 = arith.constant 0 : i32
    %c0_i32_0 = arith.constant 0 : i32
    return %arg0, %c0_i32 : i32, i32
  }
  func.func @transform_1(%arg0: i32) -> (i32, i32) {
    %c0_i32 = arith.constant 0 : i32
    %c0_i32_0 = arith.constant 0 : i32
    %c0_i32_1 = arith.constant 0 : i32
    return %c0_i32, %c0_i32_0 : i32, i32
  }
  func.func @transform_2(%arg0: i32) -> (i32, i32) {
    %c0_i32 = arith.constant 0 : i32
    %c0_i32_0 = arith.constant 0 : i32
    %c0_i32_1 = arith.constant 0 : i32
    return %c0_i32, %c0_i32_0 : i32, i32
  }
  func.func @transform_3(%arg0: i32) -> (i32, i32) {
    %c0_i32 = arith.constant 0 : i32
    %c0_i32_0 = arith.constant 0 : i32
    %c0_i32_1 = arith.constant 0 : i32
    return %c0_i32, %c0_i32_0 : i32, i32
  }
  func.func @transform_4(%arg0: i32) -> (i32, i32) {
    %c0_i32 = arith.constant 0 : i32
    %c0_i32_0 = arith.constant 0 : i32
    %c0_i32_1 = arith.constant 0 : i32
    return %c0_i32, %c0_i32_0 : i32, i32
  }
  func.func @transform_5(%arg0: i32) -> (i32, i32) {
    %c0_i32 = arith.constant 0 : i32
    %c0_i32_0 = arith.constant 0 : i32
    return %arg0, %c0_i32 : i32, i32
  }
}

</mosaic_0001>

<bundles_post_ra>
// kernel: tpu_custom_call.1
= control target key start
LH: loop header
LB: loop body
LE: loop exit
PB: predicated region body
PF: predicated region fallthrough
CT: control target
= control target key end

     0   :  { %10 = vsyncpa [#allocation3], 0  ;;  %s832_s0 = inlined_call_operand.vmem [shape: f32[16,32], index: 0, kind: input, shape index: {}]   ;;  %s833_s1 = inlined_call_operand.vmem [shape: f32[32,64], index: 1, kind: input, shape index: {}]   ;;  %s834_s2 = inlined_call_operand.vmem [shape: f32[1,64], index: 2, kind: input, shape index: {}]   ;;  %s835_s3 = inlined_call_operand.vmem [shape: f32[64,16], index: 3, kind: input, shape index: {}]   ;;  %s836_s4 = inlined_call_operand.vmem [shape: f32[1,16], index: 4, kind: input, shape index: {}]   ;;  %s837_s5 = inlined_call_operand.hbm [shape: f32[16,16], index: 5, kind: output, shape index: {}]  }
   0x1   :  { %12 = vsyncpa [#allocation3 + $0x1], 0  ;;  %s690_s18 = smov 0   ;;  %s692_s19 = smov 0  }
   0x2   :  { %s694_s20 = smov 0   ;;  %s696_s21 = smov 0  }
   0x3 LB: > { %s711_s22 = sadd.s32 4294967295, %s654_s21   ;;  %s472_s23 = sadd.s32 4294967294, %s654_s21   ;;  %s654_s21 = sphi %s696_s21, %s843_s21   ;;  %s650_s20 = sphi %s694_s20, %s842_s20   ;;  %s646_s19 = sphi %s692_s19, %s841_s19   ;;  %s642_s18 = sphi %s690_s18, %s840_s18  }
   0x4   : > { %s715_s24 = sadd.s32 1, %s654_s21   ;;  %s135_s25 = sadd.s32 1, %s650_s20 }
   0x5   : > { %s132_s26 = ssub.s32 %s654_s21, %s715_s24  ;;  %p145_p0 = scmp.ne.s32.totalorder %s650_s20, %s646_s19 }
   0x6   : > { %p133_p1 = scmp.eq.s32.totalorder %s132_s26, 0  ;;  %p146_p2 = scmp.eq.s32.totalorder %s711_s22, 1 }
   0x7   : > { %p151_p3 = scmp.ne.s32.totalorder %s646_s19, %s642_s18  ;;  %p152_p4 = scmp.eq.s32.totalorder %s472_s23, 1 }
   0x8   : > { %s726_s27 = scalar_select %p133_p1, %s650_s20, %s135_s25  }
   0x9   : > { %p728_p5 = por %p146_p2, %p145_p0  ;;  %p732_p6 = por %p152_p4, %p151_p3 }
   0xa   : > { %p475_p7 = scmp.ge.s32.totalorder %s654_s21, 1  ;;  %p189_p8 = scmp.lt.s32.totalorder %s654_s21, 3 }
   0xc   : > { %p190_p9 = pnand %p475_p7, %p189_p8 }
   0xd   : > { %v221_v0 = vld [vmem:[%s833_s1] sm:$0xff] (!%p190_p9)  ;;  %v222_v1 = vld [vmem:[%s833_s1 + $0x8] sm:$0xff] (!%p190_p9)  ;;  %v223_v2 = vld [vmem:[%s833_s1 + $0x10] sm:$0xff] (!%p190_p9)  ;;  %v656_v3 = vmov (!%p190_p9), 0.0|0.0   ;;  %vm657_vm0 = vmmov (!%p190_p9), 0   ;;  %v658_v6 = vmov (!%p190_p9), 0.0  }
   0xe   : > { %193 = sbr.rel (%p190_p9) target bundleno = 481 (0x1e1), region = 40  ;;  %530 = vmatprep.subr.bf16.mxu0 (!%p190_p9), %v656_v3  ;;  %v531_v4 = vpack.c.bf16 (!%p190_p9), %v222_v1, %v221_v0  ;;  %v224_v5 = vld [vmem:[%s833_s1 + $0x18] sm:$0xff] (!%p190_p9)  ;;  %508 = vmatprep.mubr.msk.f32.mxu0 (!%p190_p9), %vm657_vm0, %v658_v6  ;;  %p216_p10 = scmp.lt.s32.totalorder (!%p190_p9), %s711_s22, 1  ;;  %v307_v7 = vld [vmem:[%s835_s3] sm:$0xff] (!%p190_p9)  ;;  %v308_v8 = vld [vmem:[%s835_s3 + $0x8] sm:$0xff] (!%p190_p9)  ;;  %vm232_vm1 = vcmask (!%p190_p9), 261120  }
   0xf   : > { %536 = vmatprep.subr.bf16.mxu1 (!%p190_p9), %v656_v3  ;;  %v537_v9 = vpack.c.bf16 (!%p190_p9), %v308_v8, %v307_v7  ;;  %v309_v10 = vld [vmem:[%s835_s3 + $0x10] sm:$0xff] (!%p190_p9)  ;;  %v310_v11 = vld [vmem:[%s835_s3 + $0x18] sm:$0xff] (!%p190_p9)  ;;  %527 = vmatprep.mubr.msk.f32.mxu1 (!%p190_p9), %vm657_vm0, %v658_v6  ;;  %v534_v12 = vpack.c.bf16 (!%p190_p9), %v224_v5, %v223_v2  ;;  %v311_v14 = vld [vmem:[%s835_s3 + $0x20] sm:$0xff] (!%p190_p9)  ;;  %vm322_vm2 = vcmask (!%p190_p9), 523264   ;;  %s483_s8 = sshll.u32 (!%p190_p9), %s711_s22, 7  ;;  %vm397_vm3 = vcmask (!%p190_p9), 130048  }
  0x10   : > { %532 = vmatpush3.bf16.msra.mxu0 (!%p190_p9), %v531_v4  ;;  %v540_v13 = vpack.c.bf16 (!%p190_p9), %v310_v11, %v309_v10  ;;  %v312_v15 = vld [vmem:[%s835_s3 + $0x28] sm:$0xff] (!%p190_p9)  ;;  %v313_v18 = vld [vmem:[%s835_s3 + $0x30] sm:$0xff] (!%p190_p9)  ;;  %v314_v19 = vld [vmem:[%s835_s3 + $0x38] sm:$0xff] (!%p190_p9) }
  0x11   : > { %533 = vmatprep.subr.bf16.mxu0 (!%p190_p9), %v656_v3  ;;  %538 = vmatpush3.bf16.msra.mxu1 (!%p190_p9), %v537_v9  ;;  %v543_v17 = vpack.c.bf16 (!%p190_p9), %v312_v15, %v311_v14  ;;  %v546_v20 = vpack.c.bf16 (!%p190_p9), %v314_v19, %v313_v18  ;;  %v478_v21 = vld [vmem:[%s834_s2] ss:$0 sm:$0xff] (!%p190_p9) }
  0x12   : > { %539 = vmatprep.subr.bf16.mxu1 (!%p190_p9), %v656_v3  ;;  %v480_v26 = vld [vmem:[%s836_s4] ss:$0 sm:$0xff] (!%p190_p9) }
  0x14   : > { %535 = vmatpush3.bf16.msra.mxu0 (!%p190_p9), %v534_v12 }
  0x15   : > { %s217_s30 = scalar_select %p216_p10, %s711_s22, 1  ;;  %541 = vmatpush3.bf16.msra.mxu1 %v540_v13 }
  0x16   : > { %542 = vmatprep.subr.bf16.mxu1 %v656_v3  ;;  %s659_s22 = smov [#allocation2]  }
  0x17   : > { %s477_s6 = sshll.u32 %s217_s30, 3  ;;  %s596_s16 = sshll.u32 %s659_s22, 4  ;;  %s597_s16 = int_to_ptr.vmem [resolvable:$false] %s596_s16 }
  0x18   : > { %s219_s13 = scalar_lea.vmem %s832_s0, %s477_s6  ;;  %s213_s6 = sand.u32 1, %s646_s19  }
  0x19   : > { %v220_v16 = vld [vmem:[%s219_s13] sm:$0xff]  ;;  %544 = vmatpush3.bf16.msra.mxu1 %v543_v17  ;;  %s476_s7 = sshll.u32 %s213_s6, 3  ;;  %s790_s13 = scalar_lea.hbm %s837_s5, %s483_s8 }
  0x1a   : > { %509 = vmatmul.mubr.msk.f32.vlgmr.msra.gmra.mrb[0].mxu0 %vm232_vm1, %v220_v16  ;;  %545 = vmatprep.subr.bf16.mxu1 %v656_v3  ;;  %s215_s9 = scalar_lea.vmem [#allocation2], %s476_s7  ;;  %s400_s14 = scalar_lea.sflag [#allocation3], %s213_s6 }
  0x1b   : > { %s413_s10 = sshll.u32 %s215_s9, 4  ;;  %s598_s17 = scalar_lea.vmem %s597_s16, 256  ;;  %s792_s10 = int_to_ptr.vmem [resolvable:$true] %s413_s10 }
  0x1c   : > { %s592_s15 = scalar_lea.vmem %s792_s10, 128  ;;  %p599_p0 = scmp.lt.s32.totalorder %s792_s10, %s597_s16 }
  0x1d   : > { %547 = vmatpush3.bf16.msra.mxu1 %v546_v20  ;;  %p593_p11 = scmp.ne.s32.totalorder %s792_s10, %s592_s15  ;;  %p600_p1 = scmp.lt.s32.totalorder %s598_s17, %s592_s15 }
  0x1f   : > { %p594_p12 = pnand %p593_p11, %p728_p5  ;;  %p601_p2 = por %p600_p1, %p599_p0 }
  0x21   : > { %p595_p13 = pneg %p594_p12 }
  0x23   : > { %p602_p3 = pnand %p601_p2, %p595_p13 }
  0xed   : > { %v302_v22 = vpop.f32.mrb[0].mxu0 }
  0xee   : > { %v303_v23 = vadd.f32 %v478_v21, %v302_v22  ;;  %v510_v24 = vpop.f32.mrb[1].mxu0 }
  0xf0   : > { %v306_v25 = vmax.f32 %v303_v23, 0.0 }
  0xf2   : > { %528 = vmatmul.mubr.msk.f32.vlgmr.msra.gmra.mrb[0].mxu1 %vm322_vm2, %v306_v25 }
 0x1c5   : > { %v392_v27 = vpop.f32.mrb[0].mxu1 }
 0x1c6   : > { %v393_v28 = vadd.f32 %v480_v26, %v392_v27  ;;  %v529_v29 = vpop.f32.mrb[1].mxu1 }
 0x1c8   : > { %590 = vtanh.f32 %v393_v28 }
 0x1d2   : > { %v591_v30 = vpop.eup %590 }
 0x1d3   : > { %398 = vst.msk [vmem:[%s215_s9] sm:$0xff] %vm397_vm3, %v591_v30 }
 0x1d4   : > { %605 = shalt.err (!%p602_p3)
}
 0x1d5   : > { %s606_s23 = scalar_lea.hbm %s790_s13, 128  ;;  %s610_s30 = scalar_lea.hbm %s837_s5, 256 }
 0x1d6   : > { %p607_p4 = scmp.ne.s32.totalorder %s790_s13, %s606_s23  ;;  %p611_p9 = scmp.lt.u32.totalorder %s790_s13, %s837_s5 }
 0x1d7   : > { %p612_p10 = scmp.lt.u32.totalorder %s610_s30, %s606_s23  ;;  %p614_p12 = scmp.lt.u32.totalorder %s606_s23, %s790_s13 }
 0x1d8   : > { %p608_p7 = pnand %p607_p4, %p728_p5 }
 0x1d9   : > { %p613_p11 = por %p612_p10, %p611_p9 }
 0x1da   : > { %p609_p8 = pneg %p608_p7 }
 0x1db   : > { %p615_p13 = por %p614_p12, %p613_p11 }
 0x1dd   : > { %p616_p0 = pnand %p615_p13, %p609_p8 }
 0x1df   : > { %619 = shalt.err (!%p616_p0)
}
 0x1e0   : > { %548 = dma.vmem_to_hbm [thread:$0]  (%p728_p5), %s792_s10, 128, %s790_s13, %s400_s14  }
 0x1e1 PF: > { %p554_p1 = scmp.ge.s32.totalorder %s654_s21, 2  ;;  %s425_s8 = sand.u32 1, %s642_s18  }
 0x1e2   : > { %s426_s9 = scalar_lea.sflag [#allocation3], %s425_s8 }
 0x1e3   : > { %p551_p2 = pnand %p554_p1, %p732_p6 }
 0x1e5   : > { %637 = dma.done.wait (!%p551_p2), %s426_s9, 128  }
 0x1e6   : > { %639 = vsyncadd (!%p551_p2), %s426_s9, 4294967168  ;;  %p15_p3 = scmp.ge.s32.totalorder %s715_s24, 4   ;;  %s840_s18 = smov %s646_s19 }
 0x1e7   : > { %s841_s19 = smov %s650_s20  ;;  %s842_s20 = smov %s726_s27 }
 0x1e8   : > { %s843_s21 = smov %s715_s24  ;;  %17 = sbr.rel (!%p15_p3) target bundleno = 3 (0x3), region = 75 }
 0x1ef   :  { %431 = vsyncpa [#allocation3], 1 }
 0x1f0   :  { %433 = vsyncpa [#allocation3 + $0x1], 1 }

</bundles_post_ra>
